<compile_context>
chip_gen: v5e
topology: v5e:2x2
jax: 0.10.0
libtpu: 0.0.40
codegen_flags: <defaults>
</compile_context>

<pallas_src>
import jax
import jax.numpy as jnp
from jax.experimental import pallas as pl
from jax.experimental.pallas import tpu as pltpu

INPUT_DIM = 54   # fetch_covtype feature count
OUTPUT_DIM = 7   # fetch_covtype class count
HIDDEN = (64, 32, 16)


def mlp_kernel(x_ref,
               w1_ref, b1_ref,
               w2_ref, b2_ref,
               w3_ref, b3_ref,
               w4_ref, b4_ref,
               o_ref):
    compute_dtype = w1_ref.dtype  # bf16 operands -> MXU, f32 accumulation
    # x streams from HBM in its native f32; cast to the MXU dtype in-register
    # (saves the wrapper-side f32->bf16 HBM round trip).
    x = x_ref[...].astype(compute_dtype)
    # L1 + ReLU
    h = jnp.dot(x, w1_ref[...], preferred_element_type=jnp.float32)
    h = jnp.maximum(h + b1_ref[...], 0.0).astype(compute_dtype)
    # L2 + ReLU
    h = jnp.dot(h, w2_ref[...], preferred_element_type=jnp.float32)
    h = jnp.maximum(h + b2_ref[...], 0.0).astype(compute_dtype)
    # L3 + ReLU
    h = jnp.dot(h, w3_ref[...], preferred_element_type=jnp.float32)
    h = jnp.maximum(h + b3_ref[...], 0.0).astype(compute_dtype)
    # L4
    logits = jnp.dot(h, w4_ref[...], preferred_element_type=jnp.float32)
    logits = logits + b4_ref[...]
    # Numerically stable softmax over the class (last) dim, in f32.
    m = jnp.max(logits, axis=-1, keepdims=True)
    e = jnp.exp(logits - m)
    denom = jnp.sum(e, axis=-1, keepdims=True)
    # Exact normalization (7-wide denominator is cheap); rows sum to 1 tightly.
    # Note: output last dim is 7 (<128) -> masked stores. If a profile shows
    # the store slot binding (mainly v5e), a lane-dense transposed output
    # layout is the next lever; skipped here to keep the (B, 7) contract.
    o_ref[...] = (e / denom).astype(o_ref.dtype)


def mlp_forward(x, params, *, block_b=4096, compute_dtype=jnp.bfloat16):
    (w1, b1), (w2, b2), (w3, b3), (w4, b4) = params
    B = x.shape[0]

    # Batch tile: multiple of 8 sublanes (x is streamed as f32), capped at
    # block_b. Large default amortizes per-grid-step overhead at production
    # batch sizes; even TB=8192 stays a few MB, far below scoped VMEM on any
    # generation, so no vmem_limit_bytes needed.
    TB = min(block_b, ((B + 7) // 8) * 8)
    if TB >= 16:
        TB = (TB // 16) * 16  # bf16-friendly sublane packing for intermediates
    grid = (pl.cdiv(B, TB),)  # ragged tail: last block's OOB rows are masked

    ws = [w.astype(compute_dtype) for w in (w1, w2, w3, w4)]
    bs = [b.astype(jnp.float32) for b in (b1, b2, b3, b4)]

    # Constant block index -> Pallas keeps the ~25 KB of params resident in
    # VMEM across all batch tiles (one DMA total).
    const = lambda shape: pl.BlockSpec(shape, lambda i: (0, 0))

    out = pl.pallas_call(
        mlp_kernel,
        out_shape=jax.ShapeDtypeStruct((B, OUTPUT_DIM), jnp.float32),
        grid=grid,
        in_specs=[
            pl.BlockSpec((TB, INPUT_DIM), lambda i: (i, 0)),
            const(ws[0].shape), const(bs[0].shape),
            const(ws[1].shape), const(bs[1].shape),
            const(ws[2].shape), const(bs[2].shape),
            const(ws[3].shape), const(bs[3].shape),
        ],
        out_specs=pl.BlockSpec((TB, OUTPUT_DIM), lambda i: (i, 0)),
        compiler_params=pltpu.CompilerParams(
            dimension_semantics=("parallel",)),
    )(x, ws[0], bs[0], ws[1], bs[1], ws[2], bs[2], ws[3], bs[3])

    return out


def init_params(key):
    """PyTorch nn.Linear-style init: U(-1/sqrt(fan_in), 1/sqrt(fan_in)).
    Weights stored transposed, i.e. (in, out); biases stored as (1, out)."""
    dims = (INPUT_DIM,) + HIDDEN + (OUTPUT_DIM,)
    params = []
    for i in range(len(dims) - 1):
        fan_in, fan_out = dims[i], dims[i + 1]
        key, kw, kb = jax.random.split(key, 3)
        bound = 1.0 / jnp.sqrt(float(fan_in))
        w = jax.random.uniform(kw, (fan_in, fan_out), jnp.float32, -bound, bound)
        b = jax.random.uniform(kb, (1, fan_out), jnp.float32, -bound, bound)
        params.append((w, b))
    return params


def reference_forward(x, params, compute_dtype=jnp.float32):
    """Pure-JAX reference with the same mixed-precision recipe as the kernel."""
    h = x.astype(compute_dtype)
    z = None
    for i, (w, b) in enumerate(params):
        z = jnp.dot(h, w.astype(compute_dtype),
                    preferred_element_type=jnp.float32) + b.astype(jnp.float32)
        if i < len(params) - 1:
            h = jnp.maximum(z, 0.0).astype(compute_dtype)
    return jax.nn.softmax(z, axis=-1)


if __name__ == "__main__":
    key = jax.random.PRNGKey(0)
    key, kx = jax.random.split(key)
    batch = 8
    x = jax.random.normal(kx, (batch, INPUT_DIM), dtype=jnp.float32)

    params = init_params(key)

    out = jax.block_until_ready(mlp_forward(x, params))

    ref_bf16 = reference_forward(x, params, compute_dtype=jnp.bfloat16)
    ref_f32 = reference_forward(x, params, compute_dtype=jnp.float32)

    assert out.shape == (batch, OUTPUT_DIM)
    # Tight check vs. the matching mixed-precision reference.
    assert jnp.allclose(out, ref_bf16, atol=2e-3), float(jnp.max(jnp.abs(out - ref_bf16)))
    # Loose sanity check vs. the pure-f32 reference.
    assert jnp.allclose(out, ref_f32, atol=3e-2)
    # Rows of a softmax sum to 1 (exact normalization now).
    assert jnp.allclose(jnp.sum(out, axis=-1), jnp.ones((batch,)), atol=1e-5)

    # Exercise the multi-tile, ragged-tail grid path (B=200, TB=64 -> 4 steps,
    # last block only 8 valid rows; no padding or slicing in the wrapper).
    key, kx2 = jax.random.split(key)
    batch2 = 200
    x2 = jax.random.normal(kx2, (batch2, INPUT_DIM), dtype=jnp.float32)
    out2 = jax.block_until_ready(mlp_forward(x2, params, block_b=64))
    ref2 = reference_forward(x2, params, compute_dtype=jnp.bfloat16)
    assert out2.shape == (batch2, OUTPUT_DIM)
    assert jnp.allclose(out2, ref2, atol=2e-3)
    assert jnp.allclose(jnp.sum(out2, axis=-1), jnp.ones((batch2,)), atol=1e-5)

    print("KERNEL_OK")
</pallas_src>

<mosaic_0001>
module attributes {stable_mosaic.version = 11 : i64} {
  func.func @mlp_kernel(%arg0: i32, %arg1: memref<8x54xf32, #tpu.memory_space<vmem>>, %arg2: memref<54x64xbf16, #tpu.memory_space<vmem>>, %arg3: memref<1x64xf32, #tpu.memory_space<vmem>>, %arg4: memref<64x32xbf16, #tpu.memory_space<vmem>>, %arg5: memref<1x32xf32, #tpu.memory_space<vmem>>, %arg6: memref<32x16xbf16, #tpu.memory_space<vmem>>, %arg7: memref<1x16xf32, #tpu.memory_space<vmem>>, %arg8: memref<16x7xbf16, #tpu.memory_space<vmem>>, %arg9: memref<1x7xf32, #tpu.memory_space<vmem>>, %arg10: memref<8x7xf32, #tpu.memory_space<vmem>>) attributes {dimension_semantics = [#tpu.dimension_semantics<parallel>], iteration_bounds = array<i64: 1>, scalar_prefetch = 0 : i64, scratch_operands = 0 : i64, tpu.core_type = #tpu.core_type<tc>, window_params = [{transform_indices = @transform_0, window_bounds = array<i64: 8, 54>}, {pipeline_mode = #tpu.pipeline_mode<synchronous>, transform_indices = @transform_1, window_bounds = array<i64: 54, 64>}, {pipeline_mode = #tpu.pipeline_mode<synchronous>, transform_indices = @transform_2, window_bounds = array<i64: 1, 64>}, {pipeline_mode = #tpu.pipeline_mode<synchronous>, transform_indices = @transform_3, window_bounds = array<i64: 64, 32>}, {pipeline_mode = #tpu.pipeline_mode<synchronous>, transform_indices = @transform_4, window_bounds = array<i64: 1, 32>}, {pipeline_mode = #tpu.pipeline_mode<synchronous>, transform_indices = @transform_5, window_bounds = array<i64: 32, 16>}, {pipeline_mode = #tpu.pipeline_mode<synchronous>, transform_indices = @transform_6, window_bounds = array<i64: 1, 16>}, {pipeline_mode = #tpu.pipeline_mode<synchronous>, transform_indices = @transform_7, window_bounds = array<i64: 16, 7>}, {pipeline_mode = #tpu.pipeline_mode<synchronous>, transform_indices = @transform_8, window_bounds = array<i64: 1, 7>}, {transform_indices = @transform_9, window_bounds = array<i64: 8, 7>}]} {
    %c0 = arith.constant 0 : index
    %c0_0 = arith.constant 0 : index
    %0 = vector.load %arg1[%c0, %c0_0] : memref<8x54xf32, #tpu.memory_space<vmem>>, vector<8x54xf32>
    %1 = arith.truncf %0 : vector<8x54xf32> to vector<8x54xbf16>
    %c0_1 = arith.constant 0 : index
    %c0_2 = arith.constant 0 : index
    %2 = vector.load %arg2[%c0_1, %c0_2] : memref<54x64xbf16, #tpu.memory_space<vmem>>, vector<54x64xbf16>
    %cst = arith.constant dense<0.000000e+00> : vector<8x64xf32>
    %3 = tpu.matmul %1, %2, %cst {dimension_numbers = #tpu.dot_dimension_numbers<[1], [0], [0], [1], [0, 0, 1, 1], [], []>} : vector<8x54xbf16>, vector<54x64xbf16>, vector<8x64xf32> -> vector<8x64xf32>
    %c0_3 = arith.constant 0 : index
    %c0_4 = arith.constant 0 : index
    %4 = vector.load %arg3[%c0_3, %c0_4] : memref<1x64xf32, #tpu.memory_space<vmem>>, vector<1x64xf32>
    %5 = vector.broadcast %4 : vector<1x64xf32> to vector<8x64xf32>
    %6 = arith.addf %3, %5 : vector<8x64xf32>
    %cst_5 = arith.constant 0.000000e+00 : f32
    %7 = vector.broadcast %cst_5 : f32 to vector<8x64xf32>
    %8 = arith.maximumf %6, %7 : vector<8x64xf32>
    %9 = arith.truncf %8 : vector<8x64xf32> to vector<8x64xbf16>
    %c0_6 = arith.constant 0 : index
    %c0_7 = arith.constant 0 : index
    %10 = vector.load %arg4[%c0_6, %c0_7] : memref<64x32xbf16, #tpu.memory_space<vmem>>, vector<64x32xbf16>
    %cst_8 = arith.constant dense<0.000000e+00> : vector<8x32xf32>
    %11 = tpu.matmul %9, %10, %cst_8 {dimension_numbers = #tpu.dot_dimension_numbers<[1], [0], [0], [1], [0, 0, 1, 1], [], []>} : vector<8x64xbf16>, vector<64x32xbf16>, vector<8x32xf32> -> vector<8x32xf32>
    %c0_9 = arith.constant 0 : index
    %c0_10 = arith.constant 0 : index
    %12 = vector.load %arg5[%c0_9, %c0_10] : memref<1x32xf32, #tpu.memory_space<vmem>>, vector<1x32xf32>
    %13 = vector.broadcast %12 : vector<1x32xf32> to vector<8x32xf32>
    %14 = arith.addf %11, %13 : vector<8x32xf32>
    %cst_11 = arith.constant 0.000000e+00 : f32
    %15 = vector.broadcast %cst_11 : f32 to vector<8x32xf32>
    %16 = arith.maximumf %14, %15 : vector<8x32xf32>
    %17 = arith.truncf %16 : vector<8x32xf32> to vector<8x32xbf16>
    %c0_12 = arith.constant 0 : index
    %c0_13 = arith.constant 0 : index
    %18 = vector.load %arg6[%c0_12, %c0_13] : memref<32x16xbf16, #tpu.memory_space<vmem>>, vector<32x16xbf16>
    %cst_14 = arith.constant dense<0.000000e+00> : vector<8x16xf32>
    %19 = tpu.matmul %17, %18, %cst_14 {dimension_numbers = #tpu.dot_dimension_numbers<[1], [0], [0], [1], [0, 0, 1, 1], [], []>} : vector<8x32xbf16>, vector<32x16xbf16>, vector<8x16xf32> -> vector<8x16xf32>
    %c0_15 = arith.constant 0 : index
    %c0_16 = arith.constant 0 : index
    %20 = vector.load %arg7[%c0_15, %c0_16] : memref<1x16xf32, #tpu.memory_space<vmem>>, vector<1x16xf32>
    %21 = vector.broadcast %20 : vector<1x16xf32> to vector<8x16xf32>
    %22 = arith.addf %19, %21 : vector<8x16xf32>
    %cst_17 = arith.constant 0.000000e+00 : f32
    %23 = vector.broadcast %cst_17 : f32 to vector<8x16xf32>
    %24 = arith.maximumf %22, %23 : vector<8x16xf32>
    %25 = arith.truncf %24 : vector<8x16xf32> to vector<8x16xbf16>
    %c0_18 = arith.constant 0 : index
    %c0_19 = arith.constant 0 : index
    %26 = vector.load %arg8[%c0_18, %c0_19] : memref<16x7xbf16, #tpu.memory_space<vmem>>, vector<16x7xbf16>
    %cst_20 = arith.constant dense<0.000000e+00> : vector<8x7xf32>
    %27 = tpu.matmul %25, %26, %cst_20 {dimension_numbers = #tpu.dot_dimension_numbers<[1], [0], [0], [1], [0, 0, 1, 1], [], []>} : vector<8x16xbf16>, vector<16x7xbf16>, vector<8x7xf32> -> vector<8x7xf32>
    %c0_21 = arith.constant 0 : index
    %c0_22 = arith.constant 0 : index
    %28 = vector.load %arg9[%c0_21, %c0_22] : memref<1x7xf32, #tpu.memory_space<vmem>>, vector<1x7xf32>
    %29 = vector.broadcast %28 : vector<1x7xf32> to vector<8x7xf32>
    %30 = arith.addf %27, %29 : vector<8x7xf32>
    %cst_23 = arith.constant dense<0xFF800000> : vector<8xf32>
    %31 = vector.multi_reduction <maximumf>, %30, %cst_23 [1] : vector<8x7xf32> to vector<8xf32>
    %32 = vector.shape_cast %31 : vector<8xf32> to vector<8x1xf32>
    %33 = vector.broadcast %32 : vector<8x1xf32> to vector<8x7xf32>
    %34 = arith.subf %30, %33 : vector<8x7xf32>
    %35 = math.exp %34 : vector<8x7xf32>
    %cst_24 = arith.constant dense<0.000000e+00> : vector<8xf32>
    %36 = vector.multi_reduction <add>, %35, %cst_24 [1] : vector<8x7xf32> to vector<8xf32>
    %37 = vector.shape_cast %36 : vector<8xf32> to vector<8x1xf32>
    %38 = vector.broadcast %37 : vector<8x1xf32> to vector<8x7xf32>
    %39 = arith.divf %35, %38 : vector<8x7xf32>
    %c0_25 = arith.constant 0 : index
    %c0_26 = arith.constant 0 : index
    %40 = vector.load %arg10[%c0_25, %c0_26] : memref<8x7xf32, #tpu.memory_space<vmem>>, vector<8x7xf32>
    tpu.vector_store %arg10[%c0_25, %c0_26], %39 {strides = array<i32>} : memref<8x7xf32, #tpu.memory_space<vmem>>, vector<8x7xf32>,
    return
  }
  func.func @transform_0(%arg0: i32) -> (i32, i32) {
    %c0_i32 = arith.constant 0 : i32
    %c0_i32_0 = arith.constant 0 : i32
    return %arg0, %c0_i32 : i32, i32
  }
  func.func @transform_1(%arg0: i32) -> (i32, i32) {
    %c0_i32 = arith.constant 0 : i32
    %c0_i32_0 = arith.constant 0 : i32
    %c0_i32_1 = arith.constant 0 : i32
    return %c0_i32, %c0_i32_0 : i32, i32
  }
  func.func @transform_2(%arg0: i32) -> (i32, i32) {
    %c0_i32 = arith.constant 0 : i32
    %c0_i32_0 = arith.constant 0 : i32
    %c0_i32_1 = arith.constant 0 : i32
    return %c0_i32, %c0_i32_0 : i32, i32
  }
  func.func @transform_3(%arg0: i32) -> (i32, i32) {
    %c0_i32 = arith.constant 0 : i32
    %c0_i32_0 = arith.constant 0 : i32
    %c0_i32_1 = arith.constant 0 : i32
    return %c0_i32, %c0_i32_0 : i32, i32
  }
  func.func @transform_4(%arg0: i32) -> (i32, i32) {
    %c0_i32 = arith.constant 0 : i32
    %c0_i32_0 = arith.constant 0 : i32
    %c0_i32_1 = arith.constant 0 : i32
    return %c0_i32, %c0_i32_0 : i32, i32
  }
  func.func @transform_5(%arg0: i32) -> (i32, i32) {
    %c0_i32 = arith.constant 0 : i32
    %c0_i32_0 = arith.constant 0 : i32
    %c0_i32_1 = arith.constant 0 : i32
    return %c0_i32, %c0_i32_0 : i32, i32
  }
  func.func @transform_6(%arg0: i32) -> (i32, i32) {
    %c0_i32 = arith.constant 0 : i32
    %c0_i32_0 = arith.constant 0 : i32
    %c0_i32_1 = arith.constant 0 : i32
    return %c0_i32, %c0_i32_0 : i32, i32
  }
  func.func @transform_7(%arg0: i32) -> (i32, i32) {
    %c0_i32 = arith.constant 0 : i32
    %c0_i32_0 = arith.constant 0 : i32
    %c0_i32_1 = arith.constant 0 : i32
    return %c0_i32, %c0_i32_0 : i32, i32
  }
  func.func @transform_8(%arg0: i32) -> (i32, i32) {
    %c0_i32 = arith.constant 0 : i32
    %c0_i32_0 = arith.constant 0 : i32
    %c0_i32_1 = arith.constant 0 : i32
    return %c0_i32, %c0_i32_0 : i32, i32
  }
  func.func @transform_9(%arg0: i32) -> (i32, i32) {
    %c0_i32 = arith.constant 0 : i32
    %c0_i32_0 = arith.constant 0 : i32
    return %arg0, %c0_i32 : i32, i32
  }
}

</mosaic_0001>

<bundles_post_ra>
// kernel: tpu_custom_call.1
= control target key start
LH: loop header
LB: loop body
LE: loop exit
PB: predicated region body
PF: predicated region fallthrough
CT: control target
= control target key end

     0   :  { %vm72_vm0 = vcmask 1042432   ;;  %s450_s0 = inlined_call_operand.vmem [shape: f32[8,54], index: 0, kind: input, shape index: {}]   ;;  %s451_s1 = inlined_call_operand.vmem [shape: bf16[54,64], index: 1, kind: input, shape index: {}]   ;;  %s452_s2 = inlined_call_operand.vmem [shape: f32[1,64], index: 2, kind: input, shape index: {}]   ;;  %s453_s3 = inlined_call_operand.vmem [shape: bf16[64,32], index: 3, kind: input, shape index: {}]   ;;  %s454_s4 = inlined_call_operand.vmem [shape: f32[1,32], index: 4, kind: input, shape index: {}]   ;;  %s455_s5 = inlined_call_operand.vmem [shape: bf16[32,16], index: 5, kind: input, shape index: {}]   ;;  %s456_s6 = inlined_call_operand.vmem [shape: f32[1,16], index: 6, kind: input, shape index: {}]   ;;  %s457_s7 = inlined_call_operand.vmem [shape: bf16[16,7], index: 7, kind: input, shape index: {}]   ;;  %s458_s8 = inlined_call_operand.vmem [shape: f32[1,7], index: 8, kind: input, shape index: {}]   ;;  %s459_s9 = inlined_call_operand.hbm [shape: f32[8,7], index: 9, kind: output, shape index: {}]  }
   0x1   :  { %v42_v0 = vld [vmem:[%s451_s1 + $0x18] sm:$0x7]  ;;  %v305_v3 = vld [vmem:[%s453_s3 + $0x10] sm:$0xff] }
   0x2   :  { %v60_v1 = vunpack.c.l.b16 %v42_v0  ;;  %v306_v2 = vld [vmem:[%s453_s3 + $0x18] sm:$0xff] }
   0x3   :  { %135 = vmatpush.bf16.msra.mxu1 %v306_v2 }
   0x4   :  { %v64_v4 = vpack.c.b16 %v60_v1, %v60_v1 }
   0x5   :  { %14 = vsyncpa [#allocation3], 0  ;;  %v302_v6 = vld [vmem:[%s451_s1 + $0x10] sm:$0xff]  ;;  %v301_v7 = vld [vmem:[%s451_s1 + $0x8] sm:$0xff]  ;;  %vm68_vm1 = vcmask 441344   ;;  %vm127_vm2 = vcmask 523264  }
   0x6   :  { %v74_v5 = vsel %vm72_vm0, %v64_v4, 0  ;;  %v300_v8 = vld [vmem:[%s451_s1] sm:$0xff]  ;;  %v304_v11 = vld [vmem:[%s453_s3 + $0x8] sm:$0xff]  ;;  %vm166_vm3 = vcmask 261120   ;;  %vm197_vm4 = vcmask 130048   ;;  %vm214_vm5 = vcmask 56320  }
   0x7   :  { %80 = vmatpush.bf16.msra.mxu0 %v74_v5  ;;  %136 = vmatpush.bf16.msra.mxu1 %v305_v3  ;;  %v34_v9 = vld [vmem:[%s450_s0] sm:$0xff]  ;;  %v308_v19 = vld [vmem:[%s455_s5 + $0x8] sm:$0xff]  ;;  %s247_s15 = sshll.u32 %s459_s9, 4  ;;  %s248_s15 = int_to_ptr.hbm [resolvable:$true] %s247_s15 }
   0x8   :  { %v35_v10 = vpack.c.bf16 %v34_v9, %v34_v9  ;;  %v303_v12 = vld [vmem:[%s453_s3] sm:$0xff]  ;;  %176 = vmatpush.bf16.msra.mxu2 %v308_v19 }
   0x9   :  { %v311_v13 = vld [vmem:[%s452_s2] ss:$0 sm:$0xff] }
   0xa   :  { %v307_v20 = vld [vmem:[%s455_s5] sm:$0xff] }
   0xb   :  { %81 = vmatpush.bf16.msra.mxu0 %v302_v6  ;;  %137 = vmatpush.bf16.msra.mxu1 %v304_v11  ;;  %v312_v21 = vld [vmem:[%s454_s4] ss:$0 sm:$0xff] }
   0xc   :  { %177 = vmatpush.bf16.msra.mxu2 %v307_v20  ;;  %v309_v27 = vld [vmem:[%s457_s7] sm:$0xff] }
   0xd   :  { %208 = vmatpush.bf16.msra.mxu3 %v309_v27  ;;  %v313_v28 = vld [vmem:[%s456_s6] ss:$0 sm:$0xff]  ;;  %s345_s6 = smov [#allocation2]  }
   0xe   :  { %v314_v34 = vld [vmem:[%s458_s8] ss:$0 sm:$0xff]  ;;  %s245_s7 = sshll.u32 %s345_s6, 4  ;;  %s246_s7 = int_to_ptr.vmem [resolvable:$true] %s245_s7 }
   0xf   :  { %82 = vmatpush.bf16.msra.mxu0 %v301_v7  ;;  %138 = vmatpush.bf16.msra.mxu1 %v303_v12 }
  0x13   :  { %83 = vmatpush.bf16.msra.mxu0 %v300_v8 }
  0x16   :  { %268 = vmatmul.msk.bf16.vlgmr.msra.gmra.mxu0 %vm68_vm1, %v35_v10 }
  0x93   :  { %v85_v14 = vpop.f32.mrf.mxu0 }
  0x94   :  { %v86_v15 = vadd.f32 %v311_v13, %v85_v14 }
  0x96   :  { %v89_v16 = vmax.f32 %v86_v15, 0.0 }
  0x98   :  { %v90_v17 = vpack.c.bf16 %v89_v16, %v89_v16 }
  0x9a   :  { %285 = vmatmul.msk.bf16.vlgmr.msra.gmra.mxu1 %vm127_vm2, %v90_v17 }
  0x9b   :  { %v87_v18 = vpop.f32.mrf.mxu0 }
 0x117   :  { %v140_v22 = vpop.f32.mrf.mxu1 }
 0x118   :  { %v141_v23 = vadd.f32 %v312_v21, %v140_v22 }
 0x11a   :  { %v144_v24 = vmax.f32 %v141_v23, 0.0 }
 0x11c   :  { %v145_v25 = vpack.c.bf16 %v144_v24, %v144_v24 }
 0x11e   :  { %294 = vmatmul.msk.bf16.vlgmr.msra.gmra.mxu2 %vm166_vm3, %v145_v25 }
 0x11f   :  { %v142_v26 = vpop.f32.mrf.mxu1 }
 0x1a1   :  { %v179_v29 = vpop.f32.mrf.mxu2 }
 0x1a2   :  { %v180_v30 = vadd.f32 %v313_v28, %v179_v29 }
 0x1a4   :  { %v183_v31 = vmax.f32 %v180_v30, 0.0 }
 0x1a6   :  { %v184_v32 = vpack.c.bf16 %v183_v31, %v183_v31 }
 0x1a8   :  { %299 = vmatmul.msk.bf16.vlgmr.msra.gmra.mxu3 %vm197_vm4, %v184_v32 }
 0x1a9   :  { %v181_v33 = vpop.f32.mrf.mxu2 }
 0x22b   :  { %v210_v35 = vpop.f32.mrf.mxu3 }
 0x22c   :  { %v211_v36 = vadd.f32 %v314_v34, %v210_v35 }
 0x22e   :  { %v215_v37 = vsel %vm214_vm5, %v211_v36, -inf }
 0x22f   :  { %216 = vmax.xlane.f32.xlu0 %v215_v37 }
 0x233   :  { %v212_v38 = vpop.f32.mrf.mxu3 }
 0x2a2   :  { %v217_v39 = vpop.xlane.xlu0 %216 }
 0x2a3   :  { %v218_v40 = vsub.f32 %v211_v36, %v217_v39 }
 0x2a5   :  { %v219_v41 = vmul.f32 1.442695, %v218_v40 }
 0x2a7   :  { %315 = vpow2.f32 %v219_v41 }
 0x2ad   :  { %v316_v42 = vpop.eup %315 }
 0x2ae   :  { %v221_v43 = vsel %vm214_vm5, %v316_v42, 0.0 }
 0x2af   :  { %222 = vadd.xlane.f32.xlu0 %v221_v43 }
 0x322   :  { %v223_v44 = vpop.xlane.xlu0 %222 }
 0x323   :  { %317 = vrcp.f32 %v223_v44  ;;  %v235_v48 = vand.u32 2147483648, %v223_v44  ;;  %v233_v50 = vand.u32 2147483647, %v223_v44  ;;  %vm229_vm7 = vweird.f32 %v223_v44 }
 0x325   :  { %v236_v52 = vor.u32 1.1754944e-38, %v235_v48  ;;  %vm234_vm9 = vcmp.eq.f32.partialorder %v233_v50, 8.507059e+37 }
 0x329   :  { %v318_v45 = vpop.eup %317 }
 0x32a   :  { %v225_v46 = vmul.f32 %v318_v45, %v223_v44  ;;  %vm230_vm6 = vweird.f32 %v318_v45 }
 0x32b   :  { %vm231_vm8 = vmor %vm229_vm7, %vm230_vm6 }
 0x32c   :  { %v226_v47 = vsub.f32 1.0, %v225_v46 }
 0x32e   :  { %v227_v49 = vmul.f32 %v318_v45, %v226_v47 }
 0x330   :  { %v228_v51 = vadd.f32 %v318_v45, %v227_v49 }
 0x332   :  { %v232_v53 = vsel %vm231_vm8, %v318_v45, %v228_v51 }
 0x333   :  { %v237_v54 = vsel %vm234_vm9, %v236_v52, %v232_v53 }
 0x334   :  { %v238_v55 = vmul.f32 %v316_v42, %v237_v54 }
 0x336   :  { %239 = vst.msk [vmem:[#allocation2] sm:$0xff] %vm214_vm5, %v238_v55 }
 0x337   :  { %250 = dma.vmem_to_hbm [thread:$0]  %s246_s7, 128, %s248_s15, [#allocation3]  }
 0x338   :  { %343 = dma.done.wait [#allocation3], 128  }
 0x339   :  { %344 = vsyncadd [#allocation3], 4294967168 }
 0x33a   :  { %255 = vsyncpa [#allocation3], 1 }

</bundles_post_ra>
